<compile_context>
chip_gen: v6e
topology: v6e:2x2x1
jax: 0.10.0
libtpu: 0.0.40
codegen_flags: <defaults>
</compile_context>

<pallas_src>
import jax
import jax.numpy as jnp
from jax.experimental import pallas as pl
from jax.experimental.pallas import tpu as pltpu


def _round_up(x, m):
    return ((x + m - 1) // m) * m


def _fused_head_kernel(x_ref, w1_ref, shift_ref, w2_ref, b2_ref, o_ref):
    """Fused 3-head 1x1-conv MLP for one (C, tile_N) pixel tile.

    x_ref:     (C, TN)        channels-first pixel tile (input dtype, f32 ok)
    w1_ref:    (3*inner, C)   BN-folded first-conv weights (compute dtype)
    shift_ref: (3*inner, 1)   BN-folded shift (f32)
    w2_ref:    (OUT, 3*inner) block-diagonal second-conv weights (f32)
    b2_ref:    (OUT, 1)       second-conv bias (f32)
    o_ref:     (OUT, TN)      fused output rows: [seg | haf | vaf]
    """
    # Cast the feature tile to the matmul operand dtype in-register — no
    # separate HBM cast pass in the wrapper.
    xv = x_ref[...].astype(w1_ref.dtype)
    h = jnp.dot(w1_ref[...], xv, preferred_element_type=jnp.float32)
    h = jnp.maximum(h + shift_ref[...], 0.0)            # BN shift + ReLU (f32)
    # Second matmul stays f32 (M=OUT=4 -> negligible MXU work; skipping the
    # bf16 re-cast of h saves a VPU pass and VMEM).
    y = jnp.dot(w2_ref[...], h, preferred_element_type=jnp.float32)
    o_ref[...] = (y + b2_ref[...]).astype(o_ref.dtype)


def _build_fused_params(params, num_classes, *, eps=1e-5,
                        compute_dtype=jnp.bfloat16):
    """Fold BN into conv1 and fuse seg/haf/vaf into stacked / block-diag mats."""
    heads = [("seg", num_classes), ("haf", 1), ("vaf", 2)]
    w1_blocks, shift_blocks, w2_blocks, b2_blocks, out_widths = [], [], [], [], []
    for name, out_c in heads:
        p = params[name]
        scale = p["gamma"] / jnp.sqrt(p["var"] + eps)                 # (1, inner)
        shift = p["b1"] * scale + (p["beta"] - p["mean"] * scale)     # (1, inner)
        w1_blocks.append((p["w1"] * scale).T)                         # (inner, C)
        shift_blocks.append(shift.T)                                  # (inner, 1)
        w2_blocks.append(p["w2"].T)                                   # (out_c, inner)
        b2_blocks.append(p["b2"].T)                                   # (out_c, 1)
        out_widths.append(out_c)

    inner = w1_blocks[0].shape[0]
    w1_all = jnp.concatenate(w1_blocks, axis=0)                       # (3*inner, C)
    shift_all = jnp.concatenate(shift_blocks, axis=0)                 # (3*inner, 1)
    out_total = sum(out_widths)
    w2_bd = jnp.zeros((out_total, 3 * inner), jnp.float32)
    row = 0
    for i, (w2t, oc) in enumerate(zip(w2_blocks, out_widths)):
        w2_bd = w2_bd.at[row:row + oc, i * inner:(i + 1) * inner].set(w2t)
        row += oc
    b2_all = jnp.concatenate(b2_blocks, axis=0)                       # (out_total, 1)

    # First-matmul operands in compute dtype (bf16 default); everything the
    # f32 epilogue / second matmul touches stays f32.
    return (w1_all.astype(compute_dtype),
            shift_all.astype(jnp.float32),
            w2_bd.astype(jnp.float32),
            b2_all.astype(jnp.float32),
            out_widths)


def lane_af_2d_head_forward(topdown, params, *, num_classes=1,
                            compute_dtype=jnp.bfloat16, max_tile_n=8192,
                            out_dtype=jnp.float32):
    """topdown: (B, C, H, W) NCHW, matching the PyTorch module."""
    B, C, H, W = topdown.shape
    N = H * W

    w1_all, shift_all, w2_bd, b2_all, out_widths = _build_fused_params(
        params, num_classes, compute_dtype=compute_dtype)
    out_total = sum(out_widths)
    three_inner = w1_all.shape[0]

    # Channels-first, lane-dense layout: (B, C, H*W). Free reshape, no cast,
    # no pad — the ragged tail tile is handled by the cdiv grid.
    x = topdown.reshape(B, C, N)

    # Balanced tile size (multiple of 128): at most 127 wasted lanes total.
    n_target = max(1, pl.cdiv(N, max_tile_n))
    tile_n = min(_round_up(pl.cdiv(N, n_target), 128), _round_up(N, 128))
    grid_n = pl.cdiv(N, tile_n)

    full = lambda b, n: (0, 0)
    y = pl.pallas_call(
        _fused_head_kernel,
        out_shape=jax.ShapeDtypeStruct((B, out_total, N), out_dtype),
        grid_spec=pltpu.PrefetchScalarGridSpec(
            num_scalar_prefetch=0,
            grid=(B, grid_n),
            in_specs=[
                pl.BlockSpec((None, C, tile_n), lambda b, n: (b, 0, n)),
                pl.BlockSpec((three_inner, C), full),
                pl.BlockSpec((three_inner, 1), full),
                pl.BlockSpec((out_total, three_inner), full),
                pl.BlockSpec((out_total, 1), full),
            ],
            out_specs=pl.BlockSpec((None, out_total, tile_n),
                                   lambda b, n: (b, 0, n)),
        ),
        compiler_params=pltpu.CompilerParams(
            dimension_semantics=("parallel", "parallel"),
            # Big spatial tiles need more than v5e's 16 MiB scoped default;
            # 32 MiB is safe on v5e/v6e (128 MiB phys) and v7x (64 MiB phys).
            vmem_limit_bytes=32 * 1024 * 1024),
    )(x, w1_all, shift_all, w2_bd, b2_all)

    y = y.reshape(B, out_total, H, W)
    nc = out_widths[0]
    binary_seg = y[:, :nc]
    haf = y[:, nc:nc + 1]
    vaf = y[:, nc + 1:nc + 3]
    return binary_seg, haf, vaf, topdown


def init_head_params(key, in_ch, inner, out_c):
    """Deterministic parameter init for one head (conv-bn-relu-conv)."""
    k1, k2, k3, k4, k5, k6, k7, k8 = jax.random.split(key, 8)
    s1 = 1.0 / jnp.sqrt(jnp.float32(in_ch))
    s2 = 1.0 / jnp.sqrt(jnp.float32(inner))
    return dict(
        w1=jax.random.uniform(k1, (in_ch, inner), jnp.float32, -s1, s1),
        b1=jax.random.uniform(k2, (1, inner), jnp.float32, -s1, s1),
        # BatchNorm parameters (eval mode running stats, non-trivial values)
        gamma=1.0 + 0.1 * jax.random.normal(k3, (1, inner), jnp.float32),
        beta=0.1 * jax.random.normal(k4, (1, inner), jnp.float32),
        mean=0.05 * jax.random.normal(k5, (1, inner), jnp.float32),
        var=jnp.abs(1.0 + 0.1 * jax.random.normal(k6, (1, inner), jnp.float32)),
        w2=jax.random.uniform(k7, (inner, out_c), jnp.float32, -s2, s2),
        b2=jax.random.uniform(k8, (1, out_c), jnp.float32, -s2, s2),
    )


def _reference_forward(topdown, params, num_classes=1, eps=1e-5):
    """Pure-JAX f32 reference of the same math (un-fused, NHWC rows)."""
    B, C, H, W = topdown.shape
    x2d = jnp.transpose(topdown, (0, 2, 3, 1)).reshape(B * H * W, C)

    def head(p, out_c):
        scale = p["gamma"] / jnp.sqrt(p["var"] + eps)
        shift = p["beta"] - p["mean"] * scale
        h = x2d @ p["w1"] + p["b1"]
        h = jnp.maximum(h * scale + shift, 0.0)
        y = h @ p["w2"] + p["b2"]
        return jnp.transpose(y.reshape(B, H, W, out_c), (0, 3, 1, 2))

    return (head(params["seg"], num_classes),
            head(params["haf"], 1),
            head(params["vaf"], 2))


if __name__ == "__main__":
    key = jax.random.PRNGKey(0)
    k_in, k_seg, k_haf, k_vaf = jax.random.split(key, 4)

    # Small shapes consistent with the module (inner_channel = in_channel)
    B, C, H, W = 2, 32, 16, 16
    num_classes = 1
    inner = C

    topdown = jax.random.normal(k_in, (B, C, H, W), jnp.float32)
    params = dict(
        seg=init_head_params(k_seg, C, inner, num_classes),
        haf=init_head_params(k_haf, C, inner, 1),
        vaf=init_head_params(k_vaf, C, inner, 2),
    )

    # Default fast path: bf16 first-matmul operands, f32 accumulation/epilogue.
    binary_seg, haf, vaf, td = jax.block_until_ready(
        lane_af_2d_head_forward(topdown, params, num_classes=num_classes))

    assert binary_seg.shape == (B, num_classes, H, W)
    assert haf.shape == (B, 1, H, W)
    assert vaf.shape == (B, 2, H, W)
    assert td.shape == (B, C, H, W)

    ref_seg, ref_haf, ref_vaf = _reference_forward(
        topdown, params, num_classes=num_classes)

    # bf16 operands vs f32 reference: loose tolerance.
    assert jnp.allclose(binary_seg, ref_seg, atol=5e-2, rtol=5e-2)
    assert jnp.allclose(haf, ref_haf, atol=5e-2, rtol=5e-2)
    assert jnp.allclose(vaf, ref_vaf, atol=5e-2, rtol=5e-2)

    # Full-precision path of the same kernel: tight tolerance.
    seg32, haf32, vaf32, _ = jax.block_until_ready(
        lane_af_2d_head_forward(topdown, params, num_classes=num_classes,
                                compute_dtype=jnp.float32))
    assert jnp.allclose(seg32, ref_seg, atol=1e-3, rtol=1e-3)
    assert jnp.allclose(haf32, ref_haf, atol=1e-3, rtol=1e-3)
    assert jnp.allclose(vaf32, ref_vaf, atol=1e-3, rtol=1e-3)

    # Non-divisible spatial size exercises the ragged-tail (cdiv grid) path.
    H2, W2 = 15, 17
    topdown2 = jax.random.normal(k_in, (B, C, H2, W2), jnp.float32)
    seg2, haf2, vaf2, _ = jax.block_until_ready(
        lane_af_2d_head_forward(topdown2, params, num_classes=num_classes,
                                compute_dtype=jnp.float32))
    r_seg2, r_haf2, r_vaf2 = _reference_forward(
        topdown2, params, num_classes=num_classes)
    assert jnp.allclose(seg2, r_seg2, atol=1e-3, rtol=1e-3)
    assert jnp.allclose(haf2, r_haf2, atol=1e-3, rtol=1e-3)
    assert jnp.allclose(vaf2, r_vaf2, atol=1e-3, rtol=1e-3)

    print("KERNEL_OK")
</pallas_src>

<mosaic_0001>
module attributes {stable_mosaic.version = 11 : i64} {
  func.func @_fused_head_kernel(%arg0: i32, %arg1: i32, %arg2: memref<1x32x256xf32, #tpu.memory_space<vmem>>, %arg3: memref<96x32xbf16, #tpu.memory_space<vmem>>, %arg4: memref<96x1xf32, #tpu.memory_space<vmem>>, %arg5: memref<4x96xf32, #tpu.memory_space<vmem>>, %arg6: memref<4x1xf32, #tpu.memory_space<vmem>>, %arg7: memref<1x4x256xf32, #tpu.memory_space<vmem>>) attributes {dimension_semantics = [#tpu.dimension_semantics<parallel>, #tpu.dimension_semantics<parallel>], iteration_bounds = array<i64: 2, 1>, scalar_prefetch = 0 : i64, scratch_operands = 0 : i64, tpu.core_type = #tpu.core_type<tc>, window_params = [{transform_indices = @transform_0, window_bounds = array<i64: 1, 32, 256>}, {pipeline_mode = #tpu.pipeline_mode<synchronous>, transform_indices = @transform_1, window_bounds = array<i64: 96, 32>}, {pipeline_mode = #tpu.pipeline_mode<synchronous>, transform_indices = @transform_2, window_bounds = array<i64: 96, 1>}, {pipeline_mode = #tpu.pipeline_mode<synchronous>, transform_indices = @transform_3, window_bounds = array<i64: 4, 96>}, {pipeline_mode = #tpu.pipeline_mode<synchronous>, transform_indices = @transform_4, window_bounds = array<i64: 4, 1>}, {transform_indices = @transform_5, window_bounds = array<i64: 1, 4, 256>}]} {
    %c0 = arith.constant 0 : index
    %c0_0 = arith.constant 0 : index
    %c0_1 = arith.constant 0 : index
    %0 = vector.load %arg2[%c0, %c0_0, %c0_1] : memref<1x32x256xf32, #tpu.memory_space<vmem>>, vector<1x32x256xf32>
    %1 = vector.shape_cast %0 : vector<1x32x256xf32> to vector<32x256xf32>
    %2 = arith.truncf %1 : vector<32x256xf32> to vector<32x256xbf16>
    %c0_2 = arith.constant 0 : index
    %c0_3 = arith.constant 0 : index
    %3 = vector.load %arg3[%c0_2, %c0_3] : memref<96x32xbf16, #tpu.memory_space<vmem>>, vector<96x32xbf16>
    %cst = arith.constant dense<0.000000e+00> : vector<96x256xf32>
    %4 = tpu.matmul %3, %2, %cst {dimension_numbers = #tpu.dot_dimension_numbers<[1], [0], [0], [1], [0, 0, 1, 1], [], []>} : vector<96x32xbf16>, vector<32x256xbf16>, vector<96x256xf32> -> vector<96x256xf32>
    %c0_4 = arith.constant 0 : index
    %c0_5 = arith.constant 0 : index
    %5 = vector.load %arg4[%c0_4, %c0_5] : memref<96x1xf32, #tpu.memory_space<vmem>>, vector<96x1xf32>
    %6 = vector.broadcast %5 : vector<96x1xf32> to vector<96x256xf32>
    %7 = arith.addf %4, %6 : vector<96x256xf32>
    %cst_6 = arith.constant 0.000000e+00 : f32
    %8 = vector.broadcast %cst_6 : f32 to vector<96x256xf32>
    %9 = arith.maximumf %7, %8 : vector<96x256xf32>
    %c0_7 = arith.constant 0 : index
    %c0_8 = arith.constant 0 : index
    %10 = vector.load %arg5[%c0_7, %c0_8] : memref<4x96xf32, #tpu.memory_space<vmem>>, vector<4x96xf32>
    %cst_9 = arith.constant dense<0.000000e+00> : vector<4x256xf32>
    %11 = tpu.matmul %10, %9, %cst_9 {dimension_numbers = #tpu.dot_dimension_numbers<[1], [0], [0], [1], [0, 0, 1, 1], [], []>} : vector<4x96xf32>, vector<96x256xf32>, vector<4x256xf32> -> vector<4x256xf32>
    %c0_10 = arith.constant 0 : index
    %c0_11 = arith.constant 0 : index
    %12 = vector.load %arg6[%c0_10, %c0_11] : memref<4x1xf32, #tpu.memory_space<vmem>>, vector<4x1xf32>
    %13 = vector.broadcast %12 : vector<4x1xf32> to vector<4x256xf32>
    %14 = arith.addf %11, %13 : vector<4x256xf32>
    %c0_12 = arith.constant 0 : index
    %c0_13 = arith.constant 0 : index
    %c0_14 = arith.constant 0 : index
    %15 = vector.load %arg7[%c0_12, %c0_13, %c0_14] : memref<1x4x256xf32, #tpu.memory_space<vmem>>, vector<1x4x256xf32>
    %16 = vector.shape_cast %15 : vector<1x4x256xf32> to vector<4x256xf32>
    %17 = vector.shape_cast %14 : vector<4x256xf32> to vector<1x4x256xf32>
    tpu.vector_store %arg7[%c0_12, %c0_13, %c0_14], %17 {strides = array<i32>} : memref<1x4x256xf32, #tpu.memory_space<vmem>>, vector<1x4x256xf32>,
    return
  }
  func.func @transform_0(%arg0: i32, %arg1: i32) -> (i32, i32, i32) {
    %c0_i32 = arith.constant 0 : i32
    %c0_i32_0 = arith.constant 0 : i32
    return %arg0, %c0_i32, %arg1 : i32, i32, i32
  }
  func.func @transform_1(%arg0: i32, %arg1: i32) -> (i32, i32) {
    %c0_i32 = arith.constant 0 : i32
    %c0_i32_0 = arith.constant 0 : i32
    %c0_i32_1 = arith.constant 0 : i32
    return %c0_i32, %c0_i32_0 : i32, i32
  }
  func.func @transform_2(%arg0: i32, %arg1: i32) -> (i32, i32) {
    %c0_i32 = arith.constant 0 : i32
    %c0_i32_0 = arith.constant 0 : i32
    %c0_i32_1 = arith.constant 0 : i32
    return %c0_i32, %c0_i32_0 : i32, i32
  }
  func.func @transform_3(%arg0: i32, %arg1: i32) -> (i32, i32) {
    %c0_i32 = arith.constant 0 : i32
    %c0_i32_0 = arith.constant 0 : i32
    %c0_i32_1 = arith.constant 0 : i32
    return %c0_i32, %c0_i32_0 : i32, i32
  }
  func.func @transform_4(%arg0: i32, %arg1: i32) -> (i32, i32) {
    %c0_i32 = arith.constant 0 : i32
    %c0_i32_0 = arith.constant 0 : i32
    %c0_i32_1 = arith.constant 0 : i32
    return %c0_i32, %c0_i32_0 : i32, i32
  }
  func.func @transform_5(%arg0: i32, %arg1: i32) -> (i32, i32, i32) {
    %c0_i32 = arith.constant 0 : i32
    %c0_i32_0 = arith.constant 0 : i32
    return %arg0, %c0_i32, %arg1 : i32, i32, i32
  }
}

</mosaic_0001>

<bundles_post_ra>
// kernel: tpu_custom_call.1
= control target key start
LH: loop header
LB: loop body
LE: loop exit
PB: predicated region body
PF: predicated region fallthrough
CT: control target
= control target key end

     0   :  { %10 = vsyncpa [#allocation3], 0  ;;  %s1088_s0 = inlined_call_operand.vmem [shape: f32[2,32,256], index: 0, kind: input, shape index: {}]   ;;  %s1089_s1 = inlined_call_operand.vmem [shape: bf16[96,32], index: 1, kind: input, shape index: {}]   ;;  %s1090_s2 = inlined_call_operand.vmem [shape: f32[96,1], index: 2, kind: input, shape index: {}]   ;;  %s1091_s3 = inlined_call_operand.vmem [shape: f32[4,96], index: 3, kind: input, shape index: {}]   ;;  %s1092_s4 = inlined_call_operand.vmem [shape: f32[4,1], index: 4, kind: input, shape index: {}]   ;;  %s1093_s5 = inlined_call_operand.hbm [shape: f32[2,4,256], index: 5, kind: output, shape index: {}]  }
   0x1   :  { %12 = vsyncpa [#allocation3 + $0x1], 0  ;;  %s905_s18 = smov 0   ;;  %s907_s19 = smov 0  }
   0x2   :  { %s909_s20 = smov 0   ;;  %s911_s21 = smov 0  }
   0x3   :  { %s913_s22 = smov 0   ;;  %s915_s23 = smov 0  }
   0x4 LB: > { %s697_s24 = sadd.s32 4294967295, %s870_s23   ;;  %s698_s25 = sadd.s32 4294967294, %s870_s23   ;;  %s870_s23 = sphi %s915_s23, %s18_s23   ;;  %s866_s22 = sphi %s913_s22, %s1100_s22   ;;  %s862_s21 = sphi %s911_s21, %s1099_s21   ;;  %s858_s20 = sphi %s909_s20, %s1098_s20   ;;  %s854_s19 = sphi %s907_s19, %s1097_s19   ;;  %s850_s18 = sphi %s905_s18, %s1096_s18  }
   0x5   : > { %s30_s26 = sadd.s32 1, %s866_s22  ;;  %s151_s27 = sadd.s32 1, %s858_s20 }
   0x6   : > { %p32_p0 = scmp.ge.s32.totalorder %s30_s26, 2  ;;  %p161_p1 = scmp.ne.s32.totalorder %s858_s20, %s854_s19 }
   0x7   : > { %p162_p2 = scmp.eq.s32.totalorder %s697_s24, 1  ;;  %p167_p3 = scmp.ne.s32.totalorder %s854_s19, %s850_s18 }
   0x8   : > { %s1102_s26 = smov (%p32_p0, %s30_s26), 0  ;;  %p168_p5 = scmp.eq.s32.totalorder %s698_s25, 1 }
   0x9   : > { %p945_p4 = por %p162_p2, %p161_p1  ;;  %s146_s29 = ssub.s32 %s866_s22, %s1102_s26 }
   0xa   : > { %p701_p6 = scmp.ge.s32.totalorder %s870_s23, 1  ;;  %p149_p7 = scmp.eq.s32.totalorder %s146_s29, 0 }
   0xb   : > { %p952_p8 = por %p168_p5, %p167_p3  ;;  %p211_p9 = scmp.lt.s32.totalorder %s870_s23, 3 }
   0xc   : > { %s958_s6 = scalar_select %p149_p7, %s858_s20, %s151_s27  }
   0xd   : > { %p212_p10 = pnand %p701_p6, %p211_p9 }
   0xe   : > { %p244_p11 = scmp.lt.s32.totalorder (!%p212_p10), %s862_s21, 1  ;;  %s724_s9 = sshll.u32 (!%p212_p10), %s862_s21, 7 }
   0xf   : > { %215 = sbr.rel (%p212_p10) target bundleno = 490 (0x1ea), region = 40  ;;  %s619_s14 = scalar_lea.hbm (!%p212_p10), %s1093_s5, %s724_s9 }
  0x10   : > { %s874_s17 = smov (!%p212_p10), [#allocation2]  }
  0x11   : > { %s798_s24 = sshll.u32 (!%p212_p10), %s874_s17, 4  ;;  %s799_s24 = int_to_ptr.vmem [resolvable:$false] %s798_s24 }
  0x14   : > { %v872_v0 = vmov 0   ;;  %s245_s7 = scalar_select %p244_p11, %s862_s21, 1  ;;  %v290_v12 = vld [vmem:[%s1090_s2 + $0x58] sm:$0xff]  ;;  %v288_v13 = vld [vmem:[%s1090_s2 + $0x48] sm:$0xff]  ;;  %v788_v15 = vld [vmem:[%s1089_s1] sm:$0xff]   ;;  %vm381_vm0 = vcmask 261120  }
  0x15   : > { %432 = vmatprep.mubr.bf16.mxu0 %v872_v0  ;;  %462 = vmatprep.mubr.bf16.mxu1 %v872_v0  ;;  %v789_v16 = vld [vmem:[%s1089_s1 + $0x18] sm:$0xff]   ;;  %v289_v17 = vld [vmem:[%s1090_s2 + $0x50] sm:$0xff]  ;;  %v287_v18 = vld [vmem:[%s1090_s2 + $0x40] sm:$0xff]  ;;  %v873_v32 = vmov 0.0   ;;  %vm524_vm1 = vcmask 785408   ;;  %s800_s21 = scalar_lea.vmem %s799_s24, 256 }
  0x16   : > { %787 = vset.pattern.permute.xlu1 %v872_v0  ;;  %786 = vset.pattern.permute.xlu0 %v872_v0  ;;  %s723_s8 = sshll.u32 %s245_s7, 6  ;;  %v286_v19 = vld [vmem:[%s1090_s2 + $0x38] sm:$0xff]  ;;  %v285_v20 = vld [vmem:[%s1090_s2 + $0x30] sm:$0xff]  ;;  %v790_v21 = vld [vmem:[%s1089_s1 + $0x8] sm:$0xff]   ;;  %s240_s7 = sand.u32 1, %s854_s19  }
  0x17   : > { %s251_s11 = scalar_lea.vmem %s1088_s0, %s723_s8  ;;  %348 = vperm.xlu0 %786, %v290_v12   ;;  %338 = vperm.xlu1 %787, %v288_v13   ;;  %v791_v22 = vld [vmem:[%s1089_s1 + $0x20] sm:$0xff]   ;;  %v284_v23 = vld [vmem:[%s1090_s2 + $0x28] sm:$0xff]  ;;  %v282_v25 = vld [vmem:[%s1090_s2 + $0x18] sm:$0xff]  ;;  %s702_s8 = sshll.u32 %s240_s7, 3 }
  0x18   : > { %v260_v1 = vld [vmem:[%s251_s11 + $0x28] sm:$0xff]  ;;  %v262_v2 = vld [vmem:[%s251_s11 + $0x38] sm:$0xff]  ;;  %v259_v3 = vld [vmem:[%s251_s11 + $0x20] sm:$0xff]  ;;  %s242_s10 = scalar_lea.vmem [#allocation2], %s702_s8  ;;  %s605_s15 = scalar_lea.sflag [#allocation3], %s240_s7 }
  0x19   : > { %v266_v4 = vpack.c.bf16 %v262_v2, %v260_v1  ;;  %v261_v5 = vld [vmem:[%s251_s11 + $0x30] sm:$0xff]  ;;  %v256_v6 = vld [vmem:[%s251_s11 + $0x8] sm:$0xff]  ;;  %v258_v7 = vld [vmem:[%s251_s11 + $0x18] sm:$0xff] }
  0x1a   : > { %v265_v8 = vpack.c.bf16 %v261_v5, %v259_v3  ;;  %v264_v9 = vpack.c.bf16 %v258_v7, %v256_v6  ;;  %v255_v10 = vld [vmem:[%s251_s11] sm:$0xff]  ;;  %v257_v11 = vld [vmem:[%s251_s11 + $0x10] sm:$0xff]  ;;  %v793_v28 = vld [vmem:[%s1089_s1 + $0x28] sm:$0xff]   ;;  %s621_s11 = sshll.u32 %s242_s10, 4  ;;  %s622_s11 = int_to_ptr.vmem [resolvable:$true] %s621_s11 }
  0x1b   : > { %412 = vmatprep.subr.bf16.mxu0 %v266_v4  ;;  %725 = vmatprep.subr.bf16.mxu1 %v266_v4  ;;  %v263_v14 = vpack.c.bf16 %v257_v11, %v255_v10  ;;  %v283_v24 = vld [vmem:[%s1090_s2 + $0x20] sm:$0xff]  ;;  %v281_v26 = vld [vmem:[%s1090_s2 + $0x10] sm:$0xff]  ;;  %v280_v29 = vld [vmem:[%s1090_s2 + $0x8] sm:$0xff]  ;;  %s794_s16 = scalar_lea.vmem %s622_s11, 128  ;;  %p801_p1 = scmp.lt.s32.totalorder %s622_s11, %s799_s24 }
  0x1c   : > { %413 = vmatpush1.bf16.msra.mxu0 %v265_v8  ;;  %727 = vmatpush1.bf16.msra.mxu1 %v265_v8  ;;  %v792_v27 = vld [vmem:[%s1089_s1 + $0x10] sm:$0xff]   ;;  %v279_v30 = vld [vmem:[%s1090_s2] sm:$0xff]  ;;  %p795_p12 = scmp.ne.s32.totalorder %s622_s11, %s794_s16  ;;  %p802_p2 = scmp.lt.s32.totalorder %s800_s21, %s794_s16 }
  0x1d   : > { %414 = vmatprep.subr.bf16.mxu0 %v264_v9  ;;  %726 = vmatprep.subr.bf16.mxu1 %v264_v9  ;;  %v518_v31 = vld [vmem:[%s1092_s4] sm:$0xf] }
  0x1e   : > { %343 = vperm.xlu0 %786, %v289_v17   ;;  %333 = vperm.xlu1 %787, %v287_v18   ;;  %p796_p13 = pnand %p795_p12, %p945_p4  ;;  %p803_p3 = por %p802_p2, %p801_p1 }
  0x20   : > { %415 = vmatpush1.bf16.msra.mxu0 %v263_v14  ;;  %728 = vmatpush1.bf16.msra.mxu1 %v263_v14  ;;  %p797_p0 = pneg %p796_p13 }
  0x22   : > { %328 = vperm.xlu0 %786, %v286_v19   ;;  %323 = vperm.xlu1 %787, %v285_v20   ;;  %p804_p5 = pnand %p803_p3, %p797_p0 }
  0x23   : > { %711 = vmatmul.mubr.msk.bf16.vlgmr.msra.gmra.mxu0 %vm381_vm0, %v788_v15  ;;  %714 = vmatmul.mubr.msk.bf16.vlgmr.msra.gmra.mxu1 %vm381_vm0, %v789_v16 }
  0x24   : > { %442 = vmatprep.mubr.bf16.mxu0 %v872_v0  ;;  %472 = vmatprep.mubr.bf16.mxu1 %v872_v0 }
  0x26   : > { %318 = vperm.xlu0 %786, %v284_v23   ;;  %313 = vperm.xlu1 %787, %v283_v24  }
  0x2a   : > { %308 = vperm.xlu0 %786, %v282_v25   ;;  %303 = vperm.xlu1 %787, %v281_v26  }
  0x2b   : > { %712 = vmatmul.mubr.msk.bf16.gmra.mxu0 %vm381_vm0, %v790_v21  ;;  %715 = vmatmul.mubr.msk.bf16.gmra.mxu1 %vm381_vm0, %v791_v22 }
  0x2c   : > { %452 = vmatprep.mubr.bf16.mxu0 %v872_v0  ;;  %482 = vmatprep.mubr.bf16.mxu1 %v872_v0 }
  0x2e   : > { %298 = vperm.xlu0 %786, %v280_v29   ;;  %293 = vperm.xlu1 %787, %v279_v30  }
  0x32   : > { %521 = vperm.xlu0 %786, %v518_v31  }
  0x33   : > { %713 = vmatmul.mubr.msk.bf16.gmra.mxu0 %vm381_vm0, %v792_v27  ;;  %716 = vmatmul.mubr.msk.bf16.gmra.mxu1 %vm381_vm0, %v793_v28 }
  0x34   : > { %592 = vmatprep.mubr.f32.mxu1 %v873_v32 }
  0x92   : > { %v349_v41 = vpop.permute.xlu0 %348  ;;  %v339_v44 = vpop.permute.xlu1 %338 }
  0x99   : > { %v344_v49 = vpop.permute.xlu0 %343  ;;  %v334_v52 = vpop.permute.xlu1 %333 }
  0x9d   : > { %v329_v56 = vpop.permute.xlu0 %328  ;;  %v324_v58 = vpop.permute.xlu1 %323 }
  0xa1   : > { %v319_v3 = vpop.permute.xlu0 %318  ;;  %v314_v9 = vpop.permute.xlu1 %313 }
  0xa5   : > { %v309_v20 = vpop.permute.xlu0 %308  ;;  %v304_v25 = vpop.permute.xlu1 %303 }
  0xe3   : > { %v1028_v33 = vpop.f32.mrf.mxu0  ;;  %v464_v34 = vpop.f32.mrf.mxu1 }
  0xe4   : > { %v465_v19 = vadd.f32 %v464_v34, %v324_v58  ;;  %v299_v34 = vpop.permute.xlu0 %298 }
  0xe5   : > { %v1030_v35 = vpop.f32.mrf.mxu0  ;;  %v466_v36 = vpop.f32.mrf.mxu1 }
  0xe6   : > { %v467_v17 = vadd.f32 %v466_v36, %v324_v58  ;;  %v505_v29 = vmax.f32 %v465_v19, 0.0 }
  0xe7   : > { %v1032_v37 = vpop.f32.mrf.mxu0  ;;  %v468_v38 = vpop.f32.mrf.mxu1 }
  0xe8   : > { %v469_v14 = vadd.f32 %v468_v38, %v329_v56  ;;  %v506_v27 = vmax.f32 %v467_v17, 0.0 }
  0xe9   : > { %v1034_v39 = vpop.f32.mrf.mxu0  ;;  %v470_v40 = vpop.f32.mrf.mxu1 }
  0xea   : > { %v471_v12 = vadd.f32 %v470_v40, %v329_v56  ;;  %v507_v24 = vmax.f32 %v469_v14, 0.0 }
  0xeb   : > { %v1036_v42 = vpop.f32.mrf.mxu0  ;;  %v474_v43 = vpop.f32.mrf.mxu1 }
  0xec   : > { %v475_v10 = vadd.f32 %v474_v43, %v334_v52  ;;  %v508_v22 = vmax.f32 %v471_v12, 0.0  ;;  %v445_v43 = vadd.f32 %v1036_v42, %v304_v25 }
  0xed   : > { %v1038_v45 = vpop.f32.mrf.mxu0  ;;  %v476_v46 = vpop.f32.mrf.mxu1 }
  0xee   : > { %v477_v7 = vadd.f32 %v476_v46, %v334_v52  ;;  %v509_v21 = vmax.f32 %v475_v10, 0.0  ;;  %v447_v40 = vadd.f32 %v1038_v45, %v304_v25  ;;  %v497_v45 = vmax.f32 %v445_v43, 0.0 }
  0xef   : > { %v448_v47 = vpop.f32.mrf.mxu0  ;;  %v478_v48 = vpop.f32.mrf.mxu1 }
  0xf0   : > { %v479_v4 = vadd.f32 %v478_v48, %v339_v44  ;;  %v510_v18 = vmax.f32 %v477_v7, 0.0  ;;  %v449_v36 = vadd.f32 %v448_v47, %v309_v20  ;;  %v441_v48 = vadd.f32 %v1034_v39, %v299_v34 }
  0xf1   : > { %v450_v50 = vpop.f32.mrf.mxu0  ;;  %v480_v51 = vpop.f32.mrf.mxu1  ;;  %v498_v47 = vmax.f32 %v447_v40, 0.0 }
  0xf2   : > { %v481_v1 = vadd.f32 %v480_v51, %v339_v44  ;;  %v511_v15 = vmax.f32 %v479_v4, 0.0  ;;  %v451_v31 = vadd.f32 %v450_v50, %v309_v20  ;;  %v294_v44 = vpop.permute.xlu1 %293  ;;  %v439_v50 = vadd.f32 %v1032_v37, %v299_v34  ;;  %v517_v37 = vld [vmem:[%s1091_s3] sm:$0xf] }
  0xf3   : > { %v484_v53 = vpop.f32.mrf.mxu1  ;;  %v454_v54 = vpop.f32.mrf.mxu0  ;;  %v499_v51 = vmax.f32 %v449_v36, 0.0  ;;  %v437_v52 = vadd.f32 %v1030_v35, %v294_v44  ;;  %v496_v42 = vmax.f32 %v441_v48, 0.0 }
  0xf4   : > { %v485_v0 = vadd.f32 %v484_v53, %v344_v49  ;;  %v512_v13 = vmax.f32 %v481_v1, 0.0  ;;  %v455_v30 = vadd.f32 %v454_v54, %v314_v9  ;;  %v435_v53 = vadd.f32 %v1028_v33, %v294_v44  ;;  %v522_v35 = vpop.permute.xlu0 %521 }
  0xf5   : > { %v486_v55 = vpop.f32.mrf.mxu1  ;;  %v456_v59 = vpop.f32.mrf.mxu0  ;;  %v495_v54 = vmax.f32 %v439_v50, 0.0  ;;  %v494_v39 = vmax.f32 %v437_v52, 0.0 }
  0xf6   : > { %v487_v62 = vadd.f32 %v486_v55, %v344_v49  ;;  %v513_v11 = vmax.f32 %v485_v0, 0.0  ;;  %v457_v28 = vadd.f32 %v456_v59, %v314_v9  ;;  %v501_v46 = vmax.f32 %v455_v30, 0.0 }
  0xf7   : > { %v488_v57 = vpop.f32.mrf.mxu1  ;;  %v458_v5 = vpop.f32.mrf.mxu0  ;;  %v500_v49 = vmax.f32 %v451_v31, 0.0  ;;  %v493_v55 = vmax.f32 %v435_v53, 0.0 }
  0xf8   : > { %v489_v60 = vadd.f32 %v488_v57, %v349_v41  ;;  %v514_v8 = vmax.f32 %v487_v62, 0.0  ;;  %v459_v26 = vadd.f32 %v458_v5, %v319_v3 }
  0xf9   : > { %v490_v61 = vpop.f32.mrf.mxu1  ;;  %v460_v16 = vpop.f32.mrf.mxu0 }
  0xfa   : > { %v491_v63 = vadd.f32 %v490_v61, %v349_v41  ;;  %v515_v6 = vmax.f32 %v489_v60, 0.0  ;;  %v461_v23 = vadd.f32 %v460_v16, %v319_v3  ;;  %v503_v38 = vmax.f32 %v459_v26, 0.0 }
  0xfb   : > { %v502_v41 = vmax.f32 %v457_v28, 0.0 }
  0xfc   : > { %v516_v2 = vmax.f32 %v491_v63, 0.0  ;;  %v504_v32 = vmax.f32 %v461_v23, 0.0 }
  0xfe   : > { %536 = vmatprep.subr.mxu1 %v516_v2 }
  0xff   : > { %537 = vmatpush1.msra.mxu1 %v515_v6 }
 0x100   : > { %538 = vmatprep.subr.mxu1 %v514_v8 }
 0x101   : > { %539 = vmatpush1.msra.mxu1 %v513_v11 }
 0x102   : > { %540 = vmatprep.subr.mxu1 %v512_v13 }
 0x103   : > { %541 = vmatpush1.msra.mxu1 %v511_v15 }
 0x104   : > { %542 = vmatprep.subr.mxu1 %v510_v18 }
 0x105   : > { %543 = vmatpush1.msra.mxu1 %v509_v21 }
 0x106   : > { %544 = vmatprep.subr.mxu1 %v508_v22 }
 0x107   : > { %545 = vmatpush1.msra.mxu1 %v507_v24 }
 0x108   : > { %546 = vmatprep.subr.mxu1 %v506_v27 }
 0x109   : > { %547 = vmatpush1.msra.mxu1 %v505_v29 }
 0x10a   : > { %548 = vmatprep.subr.mxu1 %v504_v32 }
 0x10b   : > { %549 = vmatpush1.msra.mxu1 %v503_v38 }
 0x10c   : > { %550 = vmatprep.subr.mxu1 %v502_v41 }
 0x10d   : > { %551 = vmatpush1.msra.mxu1 %v501_v46 }
 0x10e   : > { %552 = vmatprep.subr.mxu1 %v500_v49 }
 0x10f   : > { %553 = vmatpush1.msra.mxu1 %v499_v51 }
 0x110   : > { %554 = vmatprep.subr.mxu1 %v498_v47 }
 0x111   : > { %555 = vmatpush1.msra.mxu1 %v497_v45 }
 0x112   : > { %556 = vmatprep.subr.mxu1 %v496_v42 }
 0x113   : > { %557 = vmatpush1.msra.mxu1 %v495_v54 }
 0x114   : > { %558 = vmatprep.subr.mxu1 %v494_v39 }
 0x115   : > { %559 = vmatpush1.msra.mxu1 %v493_v55 }
 0x116   : > { %717 = vmatmul.mubr.msk.f32.vlgmr.msra.gmra.mxu1 %vm524_vm1, %v517_v37 }
 0x1d6   : > { %v594_v33 = vpop.f32.mrf.mxu1 }
 0x1d7   : > { %v595_v57 = vadd.f32 %v594_v33, %v522_v35 }
 0x1d8   : > { %v596_v56 = vpop.f32.mrf.mxu1 }
 0x1d9   : > { %v597_v58 = vadd.f32 %v596_v56, %v522_v35 }
 0x1db   : > { %v601_v59 = vcombine.low %v595_v57, %v597_v58 }
 0x1dd   : > { %603 = vst [vmem:[%s242_s10] sm:$0xff] %v601_v59 }
 0x1de   : > { %807 = shalt.err (!%p804_p5)
}
 0x1df   : > { %s808_s25 = scalar_lea.hbm %s619_s14, 128  ;;  %s812_s7 = scalar_lea.hbm %s1093_s5, 256 }
 0x1e0   : > { %p809_p6 = scmp.ne.s32.totalorder %s619_s14, %s808_s25  ;;  %p813_p10 = scmp.lt.s32.totalorder %s619_s14, %s1093_s5 }
 0x1e1   : > { %p814_p11 = scmp.lt.s32.totalorder %s812_s7, %s808_s25 }
 0x1e2   : > { %p810_p7 = pnand %p809_p6, %p945_p4 }
 0x1e3   : > { %p815_p12 = por %p814_p11, %p813_p10 }
 0x1e4   : > { %p811_p9 = pneg %p810_p7 }
 0x1e6   : > { %p816_p13 = pnand %p815_p12, %p811_p9 }
 0x1e8   : > { %819 = shalt.err (!%p816_p13)
}
 0x1e9   : > { %729 = dma.vmem_to_hbm [thread:$0]  (%p945_p4), %s622_s11, 128, %s619_s14, %s605_s15  }
 0x1ea PF: > { %p735_p0 = scmp.ge.s32.totalorder %s870_s23, 2  ;;  %s633_s10 = sand.u32 1, %s850_s18  }
 0x1eb   : > { %s634_s12 = scalar_lea.sflag [#allocation3], %s633_s10 }
 0x1ec   : > { %p732_p1 = pnand %p735_p0, %p952_p8 }
 0x1ee   : > { %p733_p2 = pneg %p732_p1 }
 0x1f0   : > { %845 = dma.done.wait (%p733_p2), %s634_s12, 128  }
 0x1f1   : > { %847 = vsyncadd (%p733_p2), %s634_s12, 4294967168  ;;  %s18_s23 = sadd.s32 1, %s870_s23   ;;  %s1096_s18 = smov %s854_s19 }
 0x1f2   : > { %p15_p3 = scmp.ge.s32.totalorder %s18_s23, 4   ;;  %s1097_s19 = smov %s858_s20 }
 0x1f3   : > { %s1098_s20 = smov %s958_s6  ;;  %s1099_s21 = smov %s866_s22 }
 0x1f4   : > { %s1100_s22 = smov %s1102_s26  ;;  %17 = sbr.rel (!%p15_p3) target bundleno = 4 (0x4), region = 75 }
 0x1f9   :  { %639 = vsyncpa [#allocation3], 1 }
 0x1fa   :  { %641 = vsyncpa [#allocation3 + $0x1], 1 }

</bundles_post_ra>
